<compile_context>
chip_gen: v5e
topology: v5e:2x2
jax: 0.10.0
libtpu: 0.0.40
codegen_flags: <defaults>
</compile_context>

<pallas_src>
import jax
import jax.numpy as jnp
from jax import lax
from jax.experimental import pallas as pl
from jax.experimental.pallas import tpu as pltpu


def _round_up(x, m):
    return (x + m - 1) // m * m


def _choose_tile(full, target, align):
    """Full (padded) extent if it fits under `target`, else largest aligned tile."""
    full_pad = _round_up(full, align)
    if full_pad <= target:
        return full_pad
    return max(align, (target // align) * align)


def gcn_agg_kernel(adj_ref, feat_ref, out_ref, acc_ref, deg_ref):
    """One (i, j, k) tile of  out = diag(rsqrt(in_deg)) @ A @ (diag(rsqrt(out_deg)) @ X).

    adj_ref  : [tm, tk] int8 0/1 adjacency tile
    feat_ref : [tk, tn] pre-scaled src-feature tile (compute dtype)
    out_ref  : [tm, tn] output tile
    acc_ref  : [tm, tn] f32 matmul accumulator (resident across k)
    deg_ref  : [tm, 1]  f32 dst in-degree accumulator (resident across k)
    """
    k = pl.program_id(2)

    @pl.when(k == 0)
    def _():
        acc_ref[...] = jnp.zeros_like(acc_ref)
        deg_ref[...] = jnp.zeros_like(deg_ref)

    a = adj_ref[...]                                    # int8 tile
    # MXU matmul: upcast int8 -> compute dtype just before the dot (VPU slot,
    # hidden under the DMA in this HBM-bound kernel).
    acc_ref[...] += jnp.dot(a.astype(feat_ref.dtype), feat_ref[...],
                            preferred_element_type=jnp.float32)
    # dst in-degree row-sum (XLU, idle slot) accumulated across k — replaces a
    # full extra HBM pass over the adjacency in the XLA prologue.
    deg_ref[...] += jnp.sum(a.astype(jnp.float32), axis=1, keepdims=True)

    @pl.when(k == pl.num_programs(2) - 1)
    def _():
        norm_dst = lax.rsqrt(jnp.maximum(deg_ref[...], 1.0))   # f32, EUP
        out_ref[...] = (acc_ref[...] * norm_dst).astype(out_ref.dtype)


def base_layer_forward(adj, feat_src, *, tm=512, tn=2048, tk=1024,
                       compute_dtype=jnp.bfloat16):
    """rst = D_dst^{-1/2} A D_src^{-1/2} feat_src, tiled Pallas matmul.

    adj      : [N_dst, N_src] dense 0/1 adjacency (float or int8)
    feat_src : [N_src, F]     src node features
    returns  : [N_dst, F]     aggregated, symmetric-normalized dst features
    """
    n_dst, n_src = adj.shape
    f = feat_src.shape[1]
    out_dtype = feat_src.dtype

    # ---- prologue (plain XLA, single fused passes over the adjacency):
    # src out-degrees -> rsqrt normalizer (convert fuses into the reduction).
    out_deg = jnp.clip(jnp.sum(adj, axis=0, dtype=jnp.float32), 1.0, None)   # [N_src]
    norm_src = lax.rsqrt(out_deg)                                            # [N_src]

    # Scale features (N_src x F) instead of the adjacency; scaling in f32,
    # only the dot operand is cast down to compute_dtype.
    feat_scaled = (feat_src.astype(jnp.float32) * norm_src[:, None]
                   ).astype(compute_dtype)

    # int8 adjacency (0/1 exact): cast + pad as one fused pass, 1 byte/elem DMA.
    adj_i8 = adj if adj.dtype == jnp.int8 else adj.astype(jnp.int8)

    # ---- tile selection: cover full extents when possible (grid_n == 1 for
    # typical F), otherwise large MXU-friendly tiles; int8 sublane tiling wants
    # the adjacency row-tile to be a multiple of 32.
    tm = _choose_tile(n_dst, tm, 32)
    tk = _choose_tile(n_src, tk, 128)
    tn = _choose_tile(f, tn, 128)

    m_pad = _round_up(n_dst, tm)
    k_pad = _round_up(n_src, tk)
    n_pad = _round_up(f, tn)

    # v7x has 2 TensorCores: keep >=2 parallel grid steps on problems worth
    # splitting (v5e/v6e single-TC unaffected).
    if (m_pad // tm) * (n_pad // tn) < 2 and m_pad == tm and tm >= 512:
        tm = _round_up(tm // 2, 32)
        m_pad = _round_up(n_dst, tm)

    adj_p = jnp.pad(adj_i8, ((0, m_pad - n_dst), (0, k_pad - n_src)))
    feat_p = jnp.pad(feat_scaled, ((0, k_pad - n_src), (0, n_pad - f)))

    grid_m, grid_n, grid_k = m_pad // tm, n_pad // tn, k_pad // tk

    compute_size = jnp.dtype(compute_dtype).itemsize
    out_size = jnp.dtype(out_dtype).itemsize

    # VMEM footprint: double-buffered inputs/output + resident scratch.
    vmem_est = (2 * tm * tk * 1
                + 2 * tk * tn * compute_size
                + 2 * tm * tn * out_size
                + tm * tn * 4
                + tm * 128 * 4)
    vmem_limit = min(max(int(vmem_est * 1.5), 32 * 1024 * 1024),
                     64 * 1024 * 1024)   # stay within v7x's 64 MiB/TC

    cost = pl.CostEstimate(
        flops=2 * m_pad * k_pad * n_pad,
        transcendentals=0,
        bytes_accessed=int(adj_p.size * 1 * grid_n
                           + feat_p.size * compute_size * grid_m
                           + m_pad * n_pad * out_size),
    )

    out_p = pl.pallas_call(
        gcn_agg_kernel,
        out_shape=jax.ShapeDtypeStruct((m_pad, n_pad), out_dtype),
        grid_spec=pltpu.PrefetchScalarGridSpec(
            num_scalar_prefetch=0,
            grid=(grid_m, grid_n, grid_k),
            in_specs=[
                pl.BlockSpec((tm, tk), lambda i, j, k: (i, k)),   # int8 adjacency
                pl.BlockSpec((tk, tn), lambda i, j, k: (k, j)),   # scaled feats
            ],
            out_specs=pl.BlockSpec((tm, tn), lambda i, j, k: (i, j)),
            scratch_shapes=[pltpu.VMEM((tm, tn), jnp.float32),
                            pltpu.VMEM((tm, 1), jnp.float32)],
        ),
        compiler_params=pltpu.CompilerParams(
            dimension_semantics=("parallel", "parallel", "arbitrary"),
            vmem_limit_bytes=vmem_limit,
        ),
        cost_estimate=cost,
    )(adj_p, feat_p)

    return out_p[:n_dst, :f]


def _reference(adj, feat_src):
    """Pure-JAX reference mirroring the torch forward (sum-reduction branch)."""
    out_deg = jnp.clip(adj.sum(axis=0), 1.0, None)          # src out-degrees
    feat = feat_src * (out_deg ** -0.5)[:, None]
    agg = adj @ feat                                         # sum over neighbors
    in_deg = jnp.clip(adj.sum(axis=1), 1.0, None)            # dst in-degrees
    return agg * (in_deg ** -0.5)[:, None]


if __name__ == "__main__":
    key = jax.random.PRNGKey(0)
    k_adj, k_src = jax.random.split(key, 2)

    # Test 1: small bipartite graph, single-tile grid, f32 compute (tight check).
    N_DST, N_SRC, F = 48, 64, 128
    adj = (jax.random.uniform(k_adj, (N_DST, N_SRC)) < 0.3).astype(jnp.float32)
    feat_src = jax.random.normal(k_src, (N_SRC, F), dtype=jnp.float32)
    ref = _reference(adj, feat_src)

    out_f32 = jax.block_until_ready(
        base_layer_forward(adj, feat_src, compute_dtype=jnp.float32))
    assert out_f32.shape == (N_DST, F)
    assert jnp.allclose(out_f32, ref, atol=1e-4, rtol=1e-4), "f32 mismatch"

    # Test 2: bf16 matmul operands (v6e/v7x fast path), f32 accumulation (loose).
    out_bf16 = jax.block_until_ready(
        base_layer_forward(adj, feat_src, compute_dtype=jnp.bfloat16))
    assert out_bf16.shape == (N_DST, F)
    assert jnp.allclose(out_bf16, ref, atol=5e-2, rtol=5e-2), "bf16 mismatch"

    # Test 3: multi-tile grid with padding — exercises k accumulation, in-kernel
    # degree accumulation/finalize, and zero-padded rows/cols (256-multiple tiles).
    k2a, k2s = jax.random.split(jax.random.PRNGKey(1), 2)
    N_DST2, N_SRC2, F2 = 300, 600, 256
    adj2 = (jax.random.uniform(k2a, (N_DST2, N_SRC2)) < 0.1).astype(jnp.float32)
    feat2 = jax.random.normal(k2s, (N_SRC2, F2), dtype=jnp.float32)
    out2 = jax.block_until_ready(
        base_layer_forward(adj2, feat2, tm=256, tn=256, tk=256,
                           compute_dtype=jnp.float32))
    ref2 = _reference(adj2, feat2)
    assert out2.shape == (N_DST2, F2)
    assert jnp.allclose(out2, ref2, atol=1e-4, rtol=1e-4), "tiled mismatch"

    print("KERNEL_OK")
</pallas_src>

<mosaic_0001>
module attributes {stable_mosaic.version = 11 : i64} {
  func.func @gcn_agg_kernel(%arg0: i32, %arg1: i32, %arg2: i32, %arg3: memref<64x128xi8, #tpu.memory_space<vmem>>, %arg4: memref<128x128xf32, #tpu.memory_space<vmem>>, %arg5: memref<64x128xf32, #tpu.memory_space<vmem>>, %arg6: memref<64x128xf32, #tpu.memory_space<vmem>>, %arg7: memref<64x1xf32, #tpu.memory_space<vmem>>) attributes {dimension_semantics = [#tpu.dimension_semantics<parallel>, #tpu.dimension_semantics<parallel>, #tpu.dimension_semantics<arbitrary>], iteration_bounds = array<i64: 1, 1, 1>, scalar_prefetch = 0 : i64, scratch_operands = 2 : i64, tpu.core_type = #tpu.core_type<tc>, window_params = [{transform_indices = @transform_0, window_bounds = array<i64: 64, 128>}, {transform_indices = @transform_1, window_bounds = array<i64: 128, 128>}, {transform_indices = @transform_2, window_bounds = array<i64: 64, 128>}]} {
    %c0_i32 = arith.constant 0 : i32
    %0 = arith.cmpi eq, %arg2, %c0_i32 : i32
    %1 = arith.extui %0 : i1 to i32
    %c0_i32_0 = arith.constant 0 : i32
    %2 = arith.cmpi ne, %1, %c0_i32_0 : i32
    scf.if %2 {
      %cst_15 = arith.constant 0.000000e+00 : f32
      %19 = vector.broadcast %cst_15 : f32 to vector<64x128xf32>
      %c0_16 = arith.constant 0 : index
      %c0_17 = arith.constant 0 : index
      %20 = vector.load %arg6[%c0_16, %c0_17] : memref<64x128xf32, #tpu.memory_space<vmem>>, vector<64x128xf32>
      tpu.vector_store %arg6[%c0_16, %c0_17], %19 {strides = array<i32>} : memref<64x128xf32, #tpu.memory_space<vmem>>, vector<64x128xf32>,
      %cst_18 = arith.constant 0.000000e+00 : f32
      %21 = vector.broadcast %cst_18 : f32 to vector<64x1xf32>
      %c0_19 = arith.constant 0 : index
      %c0_20 = arith.constant 0 : index
      %22 = vector.load %arg7[%c0_19, %c0_20] : memref<64x1xf32, #tpu.memory_space<vmem>>, vector<64x1xf32>
      tpu.vector_store %arg7[%c0_19, %c0_20], %21 {strides = array<i32>} : memref<64x1xf32, #tpu.memory_space<vmem>>, vector<64x1xf32>,
    } else {
    }
    %c0 = arith.constant 0 : index
    %c0_1 = arith.constant 0 : index
    %3 = vector.load %arg3[%c0, %c0_1] : memref<64x128xi8, #tpu.memory_space<vmem>>, vector<64x128xi8>
    %c0_2 = arith.constant 0 : index
    %c0_3 = arith.constant 0 : index
    %4 = vector.load %arg6[%c0_2, %c0_3] : memref<64x128xf32, #tpu.memory_space<vmem>>, vector<64x128xf32>
    %5 = arith.sitofp %3 : vector<64x128xi8> to vector<64x128xf32>
    %c0_4 = arith.constant 0 : index
    %c0_5 = arith.constant 0 : index
    %6 = vector.load %arg4[%c0_4, %c0_5] : memref<128x128xf32, #tpu.memory_space<vmem>>, vector<128x128xf32>
    %cst = arith.constant dense<0.000000e+00> : vector<64x128xf32>
    %7 = tpu.matmul %5, %6, %cst {dimension_numbers = #tpu.dot_dimension_numbers<[1], [0], [0], [1], [0, 0, 1, 1], [], []>} : vector<64x128xf32>, vector<128x128xf32>, vector<64x128xf32> -> vector<64x128xf32>
    %8 = arith.addf %4, %7 : vector<64x128xf32>
    %c0_6 = arith.constant 0 : index
    %c0_7 = arith.constant 0 : index
    %9 = vector.load %arg6[%c0_6, %c0_7] : memref<64x128xf32, #tpu.memory_space<vmem>>, vector<64x128xf32>
    tpu.vector_store %arg6[%c0_6, %c0_7], %8 {strides = array<i32>} : memref<64x128xf32, #tpu.memory_space<vmem>>, vector<64x128xf32>,
    %c0_8 = arith.constant 0 : index
    %c0_9 = arith.constant 0 : index
    %10 = vector.load %arg7[%c0_8, %c0_9] : memref<64x1xf32, #tpu.memory_space<vmem>>, vector<64x1xf32>
    %11 = arith.sitofp %3 : vector<64x128xi8> to vector<64x128xf32>
    %cst_10 = arith.constant dense<0.000000e+00> : vector<64xf32>
    %12 = vector.multi_reduction <add>, %11, %cst_10 [1] : vector<64x128xf32> to vector<64xf32>
    %13 = vector.shape_cast %12 : vector<64xf32> to vector<64x1xf32>
    %14 = arith.addf %10, %13 : vector<64x1xf32>
    %c0_11 = arith.constant 0 : index
    %c0_12 = arith.constant 0 : index
    %15 = vector.load %arg7[%c0_11, %c0_12] : memref<64x1xf32, #tpu.memory_space<vmem>>, vector<64x1xf32>
    tpu.vector_store %arg7[%c0_11, %c0_12], %14 {strides = array<i32>} : memref<64x1xf32, #tpu.memory_space<vmem>>, vector<64x1xf32>,
    %c0_i32_13 = arith.constant 0 : i32
    %16 = arith.cmpi eq, %arg2, %c0_i32_13 : i32
    %17 = arith.extui %16 : i1 to i32
    %c0_i32_14 = arith.constant 0 : i32
    %18 = arith.cmpi ne, %17, %c0_i32_14 : i32
    scf.if %18 {
      %c0_15 = arith.constant 0 : index
      %c0_16 = arith.constant 0 : index
      %19 = vector.load %arg7[%c0_15, %c0_16] : memref<64x1xf32, #tpu.memory_space<vmem>>, vector<64x1xf32>
      %cst_17 = arith.constant 1.000000e+00 : f32
      %20 = vector.broadcast %cst_17 : f32 to vector<64x1xf32>
      %21 = arith.maximumf %19, %20 : vector<64x1xf32>
      %22 = math.rsqrt %21 : vector<64x1xf32>
      %c0_18 = arith.constant 0 : index
      %c0_19 = arith.constant 0 : index
      %23 = vector.load %arg6[%c0_18, %c0_19] : memref<64x128xf32, #tpu.memory_space<vmem>>, vector<64x128xf32>
      %24 = vector.broadcast %22 : vector<64x1xf32> to vector<64x128xf32>
      %25 = arith.mulf %23, %24 : vector<64x128xf32>
      %c0_20 = arith.constant 0 : index
      %c0_21 = arith.constant 0 : index
      %26 = vector.load %arg5[%c0_20, %c0_21] : memref<64x128xf32, #tpu.memory_space<vmem>>, vector<64x128xf32>
      tpu.vector_store %arg5[%c0_20, %c0_21], %25 {strides = array<i32>} : memref<64x128xf32, #tpu.memory_space<vmem>>, vector<64x128xf32>,
    } else {
    }
    return
  }
  func.func @transform_0(%arg0: i32, %arg1: i32, %arg2: i32) -> (i32, i32) {
    %c0_i32 = arith.constant 0 : i32
    return %arg0, %arg2 : i32, i32
  }
  func.func @transform_1(%arg0: i32, %arg1: i32, %arg2: i32) -> (i32, i32) {
    %c0_i32 = arith.constant 0 : i32
    return %arg2, %arg1 : i32, i32
  }
  func.func @transform_2(%arg0: i32, %arg1: i32, %arg2: i32) -> (i32, i32) {
    %c0_i32 = arith.constant 0 : i32
    return %arg0, %arg1 : i32, i32
  }
}

</mosaic_0001>

<bundles_post_ra>
// kernel: tpu_custom_call.1
= control target key start
LH: loop header
LB: loop body
LE: loop exit
PB: predicated region body
PF: predicated region fallthrough
CT: control target
= control target key end

     0   :  { %7 = vsyncpa [#allocation5], 0  ;;  %s659_s0 = inlined_call_operand.hbm [shape: s8[64,128], index: 0, kind: input, shape index: {}]   ;;  %s660_s1 = inlined_call_operand.hbm [shape: f32[128,128], index: 1, kind: input, shape index: {}]   ;;  %s661_s2 = inlined_call_operand.hbm [shape: f32[64,128], index: 2, kind: output, shape index: {}]  }
   0x1   :  { %8 = vsyncpa [#allocation8], 0 }
   0x2   :  { %9 = vsyncpa [#allocation6], 0  ;;  %s14_s11 = sshll.u32 %s659_s0, 4  ;;  %s540_s12 = smov [#allocation4]   ;;  %s15_s11 = int_to_ptr.hbm [resolvable:$true] %s14_s11 }
   0x3   :  { %s16_s13 = sshll.u32 %s540_s12, 4  ;;  %s27_s16 = sshll.u32 %s660_s1, 4  ;;  %s17_s13 = int_to_ptr.vmem [resolvable:$true] %s16_s13  ;;  %s28_s16 = int_to_ptr.hbm [resolvable:$true] %s27_s16 }
   0x4   :  { %s541_s17 = smov 128   ;;  %s542_s18 = smov 8  }
   0x5   :  { %22 = dma.hbm_to_vmem [thread:$0]  %s15_s11, 256, %s17_s13, [#allocation5], %s541_s17, %s541_s17, %s542_s18  }
   0x6   :  { %s543_s19 = smov [#allocation7]  }
   0x7   :  { %s29_s20 = sshll.u32 %s543_s19, 4  ;;  %s30_s20 = int_to_ptr.vmem [resolvable:$true] %s29_s20 }
   0x8   :  { %35 = dma.hbm_to_vmem [thread:$0]  %s28_s16, 2048, %s30_s20, [#allocation8], %s541_s17, %s541_s17, %s542_s18  }
   0x9   :  { %534 = dma.done.wait [#allocation5], 256  }
   0xa   :  { %535 = vsyncadd [#allocation5], 4294967040 }
   0xb   :  { %536 = dma.done.wait [#allocation8], 2048  }
   0xc   :  { %537 = vsyncadd [#allocation8], 4294965248  ;;  %v574_v0 = vld [vmem:[#allocation4 + $0x8] sm:$0xff]  ;;  %v65_v1 = vld [vmem:[#allocation4] sm:$0xff]  ;;  %vm56_vm0 = vcmask 7168   ;;  %v544_v15 = vmov 0.0  }
   0xd   :  { %v106_v2 = vld [vmem:[#allocation7 + $0x78] sm:$0xff]  ;;  %v79_v3 = vunpack.c.0.s8 %v574_v0  ;;  %v77_v4 = vunpack.c.2.s8 %v65_v1  ;;  %v75_v5 = vunpack.c.0.s8 %v65_v1  ;;  %v105_v6 = vld [vmem:[#allocation7 + $0x70] sm:$0xff]  ;;  %v104_v10 = vld [vmem:[#allocation7 + $0x68] sm:$0xff]  ;;  %v80_v11 = vunpack.c.1.s8 %v574_v0  ;;  %61 = vst.msk [vmem:[#allocation3 + $0x20] sm:$0xff] %vm56_vm0, %v544_v15  ;;  %s546_s0 = smov [#allocation9]   ;;  %s374_s23 = sshll.u32 %s661_s2, 4  ;;  %s375_s23 = int_to_ptr.hbm [resolvable:$true] %s374_s23 }
   0xe   :  { %107 = vmatpush.msra.mxu0 %v106_v2  ;;  %388 = vmatpush.msra.mxu1 %v106_v2  ;;  %v78_v12 = vunpack.c.3.s8 %v65_v1  ;;  %v103_v13 = vld [vmem:[#allocation7 + $0x60] sm:$0xff]  ;;  %v76_v14 = vunpack.c.1.s8 %v65_v1  ;;  %v102_v16 = vld [vmem:[#allocation7 + $0x58] sm:$0xff]  ;;  %57 = vst.msk [vmem:[#allocation3] sm:$0xff] %vm56_vm0, %v544_v15  ;;  %v101_v19 = vld [vmem:[#allocation7 + $0x50] sm:$0xff]  ;;  %v82_v22 = vunpack.c.3.s8 %v574_v0  ;;  %v81_v23 = vunpack.c.2.s8 %v574_v0  ;;  %s372_s1 = sshll.u32 %s546_s0, 4  ;;  %s373_s1 = int_to_ptr.vmem [resolvable:$true] %s372_s1 }
   0xf   :  { %389 = vmatpush.msra.mxu2 %v106_v2  ;;  %390 = vmatpush.msra.mxu3 %v106_v2  ;;  %v577_v7 = vcvt.s32.f32 %v79_v3  ;;  %v579_v8 = vcvt.s32.f32 %v77_v4  ;;  %v581_v9 = vcvt.s32.f32 %v75_v5  ;;  %58 = vst.msk [vmem:[#allocation3 + $0x8] sm:$0xff] %vm56_vm0, %v544_v15  ;;  %v590_v17 = vcvt.s32.f32 %v80_v11  ;;  %v100_v21 = vld [vmem:[#allocation7 + $0x48] sm:$0xff]  ;;  %v99_v24 = vld [vmem:[#allocation7 + $0x40] sm:$0xff]  ;;  %v98_v25 = vld [vmem:[#allocation7 + $0x38] sm:$0xff] }
  0x10   :  { %108 = vmatpush.msra.mxu0 %v105_v6  ;;  %391 = vmatpush.msra.mxu1 %v105_v6  ;;  %v592_v18 = vcvt.s32.f32 %v78_v12  ;;  %59 = vst.msk [vmem:[#allocation3 + $0x10] sm:$0xff] %vm56_vm0, %v544_v15  ;;  %v595_v20 = vcvt.s32.f32 %v76_v14  ;;  %v90_v26 = vcvt.s32.f32 %v82_v22  ;;  %v89_v27 = vcvt.s32.f32 %v81_v23  ;;  %v97_v28 = vld [vmem:[#allocation7 + $0x30] sm:$0xff]  ;;  %v96_v29 = vld [vmem:[#allocation7 + $0x28] sm:$0xff]  ;;  %v95_v30 = vld [vmem:[#allocation7 + $0x20] sm:$0xff] }
  0x11   :  { %392 = vmatpush.msra.mxu2 %v105_v6  ;;  %393 = vmatpush.msra.mxu3 %v105_v6  ;;  %60 = vst.msk [vmem:[#allocation3 + $0x18] sm:$0xff] %vm56_vm0, %v544_v15  ;;  %v94_v31 = vld [vmem:[#allocation7 + $0x18] sm:$0xff]  ;;  %v93_v32 = vld [vmem:[#allocation7 + $0x10] sm:$0xff]  ;;  %v92_v33 = vld [vmem:[#allocation7 + $0x8] sm:$0xff]  ;;  %v545_v35 = vmov 0  }
  0x12   :  { %180 = vadd.xlane.f32.xlu2 %v577_v7  ;;  %176 = vadd.xlane.f32.xlu1 %v579_v8  ;;  %62 = vst.msk [vmem:[#allocation3 + $0x28] sm:$0xff] %vm56_vm0, %v544_v15  ;;  %v91_v34 = vld [vmem:[#allocation7] sm:$0xff] }
  0x13   :  { %172 = vadd.xlane.f32.xlu0 %v581_v9  ;;  %109 = vmatpush.msra.mxu0 %v104_v10  ;;  %63 = vst.msk [vmem:[#allocation3 + $0x30] sm:$0xff] %vm56_vm0, %v544_v15 }
  0x14   :  { %394 = vmatpush.msra.mxu1 %v104_v10  ;;  %395 = vmatpush.msra.mxu2 %v104_v10  ;;  %64 = vst.msk [vmem:[#allocation3 + $0x38] sm:$0xff] %vm56_vm0, %v544_v15  ;;  %v168_v36 = vld [vmem:[#allocation3 + $0x20] sm:$0xff] }
  0x15   :  { %110 = vmatpush.msra.mxu0 %v103_v13  ;;  %396 = vmatpush.msra.mxu3 %v104_v10  ;;  %v164_v38 = vld [vmem:[#allocation3] sm:$0xff] }
  0x16   :  { %397 = vmatpush.msra.mxu1 %v103_v13  ;;  %398 = vmatpush.msra.mxu2 %v103_v13  ;;  %v165_v47 = vld [vmem:[#allocation3 + $0x8] sm:$0xff] }
  0x17   :  { %111 = vmatpush.msra.mxu0 %v102_v16  ;;  %399 = vmatpush.msra.mxu3 %v103_v13  ;;  %v166_v37 = vld [vmem:[#allocation3 + $0x10] sm:$0xff] }
  0x18   :  { %400 = vmatpush.msra.mxu1 %v102_v16  ;;  %401 = vmatpush.msra.mxu2 %v102_v16  ;;  %v167_v46 = vld [vmem:[#allocation3 + $0x18] sm:$0xff] }
  0x19   :  { %112 = vmatpush.msra.mxu0 %v101_v19  ;;  %402 = vmatpush.msra.mxu3 %v102_v16  ;;  %v169_v45 = vld [vmem:[#allocation3 + $0x28] sm:$0xff] }
  0x1a   :  { %182 = vadd.xlane.f32.xlu2 %v590_v17  ;;  %178 = vadd.xlane.f32.xlu1 %v592_v18  ;;  %v170_v61 = vld [vmem:[#allocation3 + $0x30] sm:$0xff] }
  0x1b   :  { %174 = vadd.xlane.f32.xlu0 %v595_v20  ;;  %403 = vmatpush.msra.mxu1 %v101_v19  ;;  %v171_v59 = vld [vmem:[#allocation3 + $0x38] sm:$0xff] }
  0x1c   :  { %113 = vmatpush.msra.mxu0 %v100_v21  ;;  %404 = vmatpush.msra.mxu2 %v101_v19 }
  0x1d   :  { %406 = vmatpush.msra.mxu1 %v100_v21  ;;  %405 = vmatpush.msra.mxu3 %v101_v19 }
  0x1e   :  { %114 = vmatpush.msra.mxu0 %v99_v24  ;;  %407 = vmatpush.msra.mxu2 %v100_v21 }
  0x1f   :  { %409 = vmatpush.msra.mxu1 %v99_v24  ;;  %408 = vmatpush.msra.mxu3 %v100_v21 }
  0x20   :  { %115 = vmatpush.msra.mxu0 %v98_v25  ;;  %410 = vmatpush.msra.mxu2 %v99_v24 }
  0x21   :  { %412 = vmatpush.msra.mxu1 %v98_v25  ;;  %411 = vmatpush.msra.mxu3 %v99_v24 }
  0x22   :  { %186 = vadd.xlane.f32.xlu1 %v90_v26  ;;  %116 = vmatpush.msra.mxu0 %v97_v28 }
  0x23   :  { %184 = vadd.xlane.f32.xlu0 %v89_v27  ;;  %415 = vmatpush.msra.mxu1 %v97_v28 }
  0x24   :  { %117 = vmatpush.msra.mxu0 %v96_v29  ;;  %413 = vmatpush.msra.mxu2 %v98_v25 }
  0x25   :  { %418 = vmatpush.msra.mxu1 %v96_v29  ;;  %414 = vmatpush.msra.mxu3 %v98_v25 }
  0x26   :  { %118 = vmatpush.msra.mxu0 %v95_v30  ;;  %416 = vmatpush.msra.mxu2 %v97_v28 }
  0x27   :  { %421 = vmatpush.msra.mxu1 %v95_v30  ;;  %417 = vmatpush.msra.mxu3 %v97_v28 }
  0x28   :  { %119 = vmatpush.msra.mxu0 %v94_v31  ;;  %419 = vmatpush.msra.mxu2 %v96_v29 }
  0x29   :  { %424 = vmatpush.msra.mxu1 %v94_v31  ;;  %420 = vmatpush.msra.mxu3 %v96_v29 }
  0x2a   :  { %120 = vmatpush.msra.mxu0 %v93_v32  ;;  %422 = vmatpush.msra.mxu2 %v95_v30 }
  0x2b   :  { %427 = vmatpush.msra.mxu1 %v93_v32  ;;  %423 = vmatpush.msra.mxu3 %v95_v30 }
  0x2c   :  { %121 = vmatpush.msra.mxu0 %v92_v33  ;;  %425 = vmatpush.msra.mxu2 %v94_v31 }
  0x2d   :  { %430 = vmatpush.msra.mxu1 %v92_v33  ;;  %426 = vmatpush.msra.mxu3 %v94_v31 }
  0x2e   :  { %122 = vmatpush.msra.mxu0 %v91_v34  ;;  %428 = vmatpush.msra.mxu2 %v93_v32 }
  0x2f   :  { %433 = vmatpush.msra.mxu1 %v91_v34  ;;  %123 = vmatmul.f32.vlgmr.msra.gmra.mxu0 %v581_v9 }
  0x30   :  { %129 = vmatmul.f32.vlgmr.msra.gmra.mxu1 %v579_v8  ;;  %431 = vmatpush.msra.mxu2 %v92_v33 }
  0x31   :  { %429 = vmatpush.msra.mxu3 %v93_v32  ;;  %445 = vset.pattern.permute.xlu1 %v545_v35 }
  0x32   :  { %434 = vmatpush.msra.mxu2 %v91_v34  ;;  %443 = vset.pattern.permute.xlu2 %v545_v35 }
  0x33   :  { %135 = vmatmul.f32.vlgmr.msra.gmra.mxu2 %v577_v7  ;;  %432 = vmatpush.msra.mxu3 %v92_v33 }
  0x34   :  { %444 = vset.pattern.permute.xlu0 %v545_v35 }
  0x35   :  { %435 = vmatpush.msra.mxu3 %v91_v34 }
  0x36   :  { %141 = vmatmul.f32.vlgmr.msra.gmra.mxu3 %v89_v27 }
  0x37   :  { %126 = vmatmul.f32.gmra.mxu0 %v595_v20 }
  0x38   :  { %132 = vmatmul.f32.gmra.mxu1 %v592_v18 }
  0x3b   :  { %138 = vmatmul.f32.gmra.mxu2 %v590_v17 }
  0x3e   :  { %144 = vmatmul.f32.gmra.mxu3 %v90_v26 }
  0x85   :  { %v181_v39 = vpop.xlane.xlu2 %180  ;;  %v177_v40 = vpop.xlane.xlu1 %176 }
  0x86   :  { %v192_v41 = vadd.f32 %v181_v39, %v168_v36  ;;  %v190_v42 = vadd.f32 %v177_v40, %v166_v37  ;;  %v173_v43 = vpop.xlane.xlu0 %172 }
  0x87   :  { %v188_v44 = vadd.f32 %v173_v43, %v164_v38 }
  0x88   :  { %201 = vst.msk [vmem:[#allocation3 + $0x20] sm:$0xff] %vm56_vm0, %v192_v41 }
  0x89   :  { %199 = vst.msk [vmem:[#allocation3 + $0x10] sm:$0xff] %vm56_vm0, %v190_v42 }
  0x8a   :  { %197 = vst.msk [vmem:[#allocation3] sm:$0xff] %vm56_vm0, %v188_v44 }
  0x8d   :  { %v183_v48 = vpop.xlane.xlu2 %182  ;;  %v179_v49 = vpop.xlane.xlu1 %178 }
  0x8e   :  { %v193_v50 = vadd.f32 %v183_v48, %v169_v45  ;;  %v191_v51 = vadd.f32 %v179_v49, %v167_v46  ;;  %v175_v52 = vpop.xlane.xlu0 %174 }
  0x8f   :  { %v189_v53 = vadd.f32 %v175_v52, %v165_v47  ;;  %v212_v55 = vld [vmem:[#allocation3 + $0x20] sm:$0xff] }
  0x90   :  { %202 = vst.msk [vmem:[#allocation3 + $0x28] sm:$0xff] %vm56_vm0, %v193_v50  ;;  %v210_v54 = vld [vmem:[#allocation3 + $0x10] sm:$0xff]  ;;  %v618_v60 = vmax.f32 %v212_v55, 1.0 }
  0x91   :  { %200 = vst.msk [vmem:[#allocation3 + $0x18] sm:$0xff] %vm56_vm0, %v191_v51  ;;  %v218_v56 = vmax.f32 %v210_v54, 1.0  ;;  %v208_v57 = vld [vmem:[#allocation3] sm:$0xff] }
  0x92   :  { %198 = vst.msk [vmem:[#allocation3 + $0x8] sm:$0xff] %vm56_vm0, %v189_v53  ;;  %v216_v58 = vmax.f32 %v208_v57, 1.0 }
  0x93   :  { %446 = vrsqrt.f32 %v218_v56  ;;  %vm250_vm4 = vweird.f32 %v218_v56 }
  0x94   :  { %448 = vrsqrt.f32 %v216_v58  ;;  %vm230_vm1 = vweird.f32 %v216_v58 }
  0x95   :  { %v187_v62 = vpop.xlane.xlu1 %186  ;;  %450 = vrsqrt.f32 %v618_v60 }
  0x96   :  { %v195_v63 = vadd.f32 %v187_v62, %v171_v59  ;;  %v185_v0 = vpop.xlane.xlu0 %184 }
  0x97   :  { %v194_v1 = vadd.f32 %v185_v0, %v170_v61  ;;  %v213_v2 = vld [vmem:[#allocation3 + $0x28] sm:$0xff] }
  0x98   :  { %204 = vst.msk [vmem:[#allocation3 + $0x38] sm:$0xff] %vm56_vm0, %v195_v63  ;;  %v221_v3 = vmax.f32 %v213_v2, 1.0  ;;  %v211_v4 = vld [vmem:[#allocation3 + $0x18] sm:$0xff] }
  0x99   :  { %v447_v5 = vpop.eup %446  ;;  %203 = vst.msk [vmem:[#allocation3 + $0x30] sm:$0xff] %vm56_vm0, %v194_v1  ;;  %v209_v6 = vld [vmem:[#allocation3 + $0x8] sm:$0xff]  ;;  %v623_v7 = vmax.f32 %v211_v4, 1.0 }
  0x9a   :  { %v449_v8 = vpop.eup %448  ;;  %v245_v9 = vmul.f32 %v447_v5, %v218_v56  ;;  %452 = vrsqrt.f32 %v221_v3  ;;  %v625_v11 = vmax.f32 %v209_v6, 1.0  ;;  %vm251_vm2 = vweird.f32 %v447_v5 }
  0x9b   :  { %v225_v10 = vmul.f32 %v449_v8, %v216_v58  ;;  %454 = vrsqrt.f32 %v623_v7  ;;  %v628_v13 = vpop.eup %450  ;;  %vm231_vm3 = vweird.f32 %v449_v8  ;;  %vm252_vm5 = vmor %vm250_vm4, %vm251_vm2  ;;  %vm280_vm8 = vweird.f32 %v221_v3 }
  0x9c   :  { %v246_v12 = vmul.f32 %v447_v5, %v245_v9  ;;  %456 = vrsqrt.f32 %v625_v11  ;;  %v265_v21 = vmul.f32 %v628_v13, %v618_v60  ;;  %vm232_vm6 = vmor %vm230_vm1, %vm231_vm3  ;;  %vm260_vm10 = vweird.f32 %v623_v7 }
  0x9d   :  { %v226_v14 = vmul.f32 %v449_v8, %v225_v10  ;;  %vm240_vm12 = vweird.f32 %v625_v11  ;;  %vm271_vm2 = vweird.f32 %v628_v13  ;;  %vm270_vm4 = vweird.f32 %v618_v60 }
  0x9e   :  { %v247_v15 = vmul.f32 0.5, %v246_v12  ;;  %v266_v37 = vmul.f32 %v628_v13, %v265_v21 }
  0x9f   :  { %v227_v16 = vmul.f32 0.5, %v226_v14  ;;  %v215_v17 = vld [vmem:[#allocation3 + $0x38] sm:$0xff] }
  0xa0   :  { %v453_v18 = vpop.eup %452  ;;  %v248_v19 = vsub.f32 1.5, %v247_v15  ;;  %v631_v20 = vmax.f32 %v215_v17, 1.0  ;;  %v214_v22 = vld [vmem:[#allocation3 + $0x30] sm:$0xff]  ;;  %v267_v46 = vmul.f32 0.5, %v266_v37 }
  0xa1   :  { %v455_v23 = vpop.eup %454  ;;  %v228_v24 = vsub.f32 1.5, %v227_v16  ;;  %v275_v25 = vmul.f32 %v453_v18, %v221_v3  ;;  %v635_v26 = vmax.f32 %v214_v22, 1.0  ;;  %vm281_vm7 = vweird.f32 %v453_v18 }
  0xa2   :  { %v249_v27 = vmul.f32 %v447_v5, %v248_v19  ;;  %v255_v28 = vmul.f32 %v455_v23, %v623_v7  ;;  %458 = vrsqrt.f32 %v631_v20  ;;  %v457_v29 = vpop.eup %456  ;;  %vm261_vm9 = vweird.f32 %v455_v23  ;;  %vm282_vm11 = vmor %vm280_vm8, %vm281_vm7 }
  0xa3   :  { %v229_v30 = vmul.f32 %v449_v8, %v228_v24  ;;  %v276_v31 = vmul.f32 %v453_v18, %v275_v25  ;;  %v235_v33 = vmul.f32 %v457_v29, %v625_v11  ;;  %460 = vrsqrt.f32 %v635_v26  ;;  %vm262_vm14 = vmor %vm260_vm10, %vm261_vm9 }
  0xa4   :  { %v253_v32 = vsel %vm252_vm5, %v447_v5, %v249_v27  ;;  %v256_v34 = vmul.f32 %v455_v23, %v255_v28  ;;  %vm241_vm13 = vweird.f32 %v457_v29  ;;  %v268_v56 = vsub.f32 1.5, %v267_v46  ;;  %vm272_vm5 = vmor %vm270_vm4, %vm271_vm2 }
  0xa5   :  { %324 = vperm.xlu1 %445, %v253_v32   ;;  %v233_v35 = vsel %vm232_vm6, %v449_v8, %v229_v30  ;;  %v277_v36 = vmul.f32 0.5, %v276_v31  ;;  %v236_v38 = vmul.f32 %v457_v29, %v235_v33  ;;  %vm242_vm15 = vmor %vm240_vm12, %vm241_vm13  ;;  %vm300_vm1 = vweird.f32 %v631_v20 }
  0xa6   :  { %314 = vperm.xlu2 %443, %v233_v35   ;;  %v257_v39 = vmul.f32 0.5, %v256_v34  ;;  %v269_v63 = vmul.f32 %v628_v13, %v268_v56  ;;  %vm290_vm6 = vweird.f32 %v635_v26 }
  0xa7   :  { %v278_v40 = vsub.f32 1.5, %v277_v36  ;;  %v237_v42 = vmul.f32 0.5, %v236_v38 }
  0xa8   :  { %v459_v41 = vpop.eup %458  ;;  %v258_v43 = vsub.f32 1.5, %v257_v39  ;;  %v273_v2 = vsel %vm272_vm5, %v628_v13, %v269_v63 }
  0xa9   :  { %v279_v44 = vmul.f32 %v453_v18, %v278_v40  ;;  %v295_v45 = vmul.f32 %v459_v41, %v631_v20  ;;  %v238_v47 = vsub.f32 1.5, %v237_v42  ;;  %v461_v49 = vpop.eup %460  ;;  %vm301_vm0 = vweird.f32 %v459_v41 }
  0xaa   :  { %v259_v48 = vmul.f32 %v455_v23, %v258_v43  ;;  %v285_v54 = vmul.f32 %v461_v49, %v635_v26  ;;  %vm302_vm3 = vmor %vm300_vm1, %vm301_vm0  ;;  %vm291_vm7 = vweird.f32 %v461_v49 }
  0xab   :  { %v283_v50 = vsel %vm282_vm11, %v453_v18, %v279_v44  ;;  %v296_v51 = vmul.f32 %v459_v41, %v295_v45  ;;  %v239_v52 = vmul.f32 %v457_v29, %v238_v47  ;;  %vm292_vm8 = vmor %vm290_vm6, %vm291_vm7 }
  0xac   :  { %v263_v53 = vsel %vm262_vm14, %v455_v23, %v259_v48  ;;  %v286_v58 = vmul.f32 %v461_v49, %v285_v54  ;;  %v124_v6 = vpop.f32.mrf.mxu0 }
  0xad   :  { %339 = vperm.xlu1 %445, %v283_v50   ;;  %v297_v55 = vmul.f32 0.5, %v296_v51  ;;  %v243_v57 = vsel %vm242_vm15, %v457_v29, %v239_v52  ;;  %v130_v5 = vpop.f32.mrf.mxu1 }
  0xae   :  { %329 = vperm.xlu2 %443, %v263_v53   ;;  %319 = vperm.xlu0 %444, %v243_v57   ;;  %v287_v61 = vmul.f32 0.5, %v286_v58 }
  0xaf   :  { %v298_v59 = vsub.f32 1.5, %v297_v55 }
  0xb0   :  { %v288_v1 = vsub.f32 1.5, %v287_v61 }
  0xb1   :  { %v299_v62 = vmul.f32 %v459_v41, %v298_v59 }
  0xb2   :  { %v289_v3 = vmul.f32 %v461_v49, %v288_v1 }
  0xb3   :  { %v303_v0 = vsel %vm302_vm3, %v459_v41, %v299_v62 }
  0xb4   :  { %v293_v4 = vsel %vm292_vm8, %v461_v49, %v289_v3  ;;  %v127_v20 = vpop.f32.mrf.mxu0 }
  0xb5   :  { %349 = vperm.xlu1 %445, %v303_v0   ;;  %v133_v9 = vpop.f32.mrf.mxu1 }
  0xb6   :  { %334 = vperm.xlu2 %443, %v273_v2   ;;  %v136_v11 = vpop.f32.mrf.mxu2 }
  0xb9   :  { %v142_v14 = vpop.f32.mrf.mxu3 }
  0xbe   :  { %344 = vperm.xlu2 %443, %v293_v4   ;;  %v139_v19 = vpop.f32.mrf.mxu2 }
  0xc1   :  { %v145_v25 = vpop.f32.mrf.mxu3 }
 0x100   :  { %v315_v7 = vpop.permute.xlu2 %314 }
 0x101   :  { %v352_v8 = vmul.f32 %v315_v7, %v124_v6 }
 0x103   :  { %360 = vst [vmem:[#allocation9] sm:$0xff] %v352_v8 }
 0x108   :  { %v330_v60 = vpop.permute.xlu2 %329 }
 0x109   :  { %v355_v10 = vmul.f32 %v330_v60, %v133_v9 }
 0x10b   :  { %363 = vst [vmem:[#allocation9 + $0x18] sm:$0xff] %v355_v10 }
 0x110   :  { %v335_v12 = vpop.permute.xlu2 %334 }
 0x111   :  { %v356_v13 = vmul.f32 %v335_v12, %v136_v11 }
 0x113   :  { %364 = vst [vmem:[#allocation9 + $0x20] sm:$0xff] %v356_v13 }
 0x117   :  { %v325_v15 = vpop.permute.xlu1 %324 }
 0x118   :  { %v354_v16 = vmul.f32 %v325_v15, %v130_v5  ;;  %v345_v17 = vpop.permute.xlu2 %344 }
 0x119   :  { %v358_v18 = vmul.f32 %v345_v17, %v142_v14 }
 0x11a   :  { %362 = vst [vmem:[#allocation9 + $0x10] sm:$0xff] %v354_v16 }
 0x11b   :  { %366 = vst [vmem:[#allocation9 + $0x30] sm:$0xff] %v358_v18 }
 0x11f   :  { %v340_v21 = vpop.permute.xlu1 %339 }
 0x120   :  { %v357_v22 = vmul.f32 %v340_v21, %v139_v19  ;;  %v320_v23 = vpop.permute.xlu0 %319 }
 0x121   :  { %v353_v24 = vmul.f32 %v320_v23, %v127_v20 }
 0x122   :  { %365 = vst [vmem:[#allocation9 + $0x28] sm:$0xff] %v357_v22 }
 0x123   :  { %361 = vst [vmem:[#allocation9 + $0x8] sm:$0xff] %v353_v24 }
 0x127   :  { %v350_v26 = vpop.permute.xlu1 %349 }
 0x128   :  { %v359_v27 = vmul.f32 %v350_v26, %v145_v25 }
 0x12a   :  { %367 = vst [vmem:[#allocation9 + $0x38] sm:$0xff] %v359_v27 }
 0x12b   :  { %380 = dma.vmem_to_hbm [thread:$0]  %s373_s1, 1024, %s375_s23, [#allocation6], %s541_s17, %s541_s17, %s542_s18  }
 0x12c   :  { %538 = dma.done.wait [#allocation6], 1024  }
 0x12d   :  { %539 = vsyncadd [#allocation6], 4294966272 }
 0x12e   :  { %385 = vsyncpa [#allocation5], 1 }
 0x12f   :  { %386 = vsyncpa [#allocation8], 1 }
 0x130   :  { %387 = vsyncpa [#allocation6], 1 }

</bundles_post_ra>
